<compile_context>
chip_gen: v6e
topology: v6e:2x2x1
jax: 0.10.0
libtpu: 0.0.40
codegen_flags: <defaults>
</compile_context>

<pallas_src>
import jax
import jax.numpy as jnp
from jax.experimental import pallas as pl
from jax.experimental.pallas import tpu as pltpu
from jax.scipy.linalg import block_diag


def _round_up(x, m):
    return ((x + m - 1) // m) * m


def _critic_kernel(x_ref, a_ref,
                   w1x_ref, w1a_ref, b1_ref,
                   w2_ref, b2_ref,
                   w3_ref, b3_ref,
                   w4_ref, b4_ref,
                   out_ref):
    # Layer 1: split bf16 matmul replaces the concat([x, a]) of the reference.
    # f32 accumulation on the MXU, bias add + ReLU in f32 on the VPU.
    h = (jnp.dot(x_ref[...], w1x_ref[...], preferred_element_type=jnp.float32)
         + jnp.dot(a_ref[...], w1a_ref[...], preferred_element_type=jnp.float32)
         + b1_ref[...])
    h = jnp.maximum(h, 0.0)
    # Layers 2/3: block-diagonal fused (C*H -> C*H) bf16 matmuls (padded to 128).
    h = jnp.maximum(
        jnp.dot(h.astype(jnp.bfloat16), w2_ref[...],
                preferred_element_type=jnp.float32) + b2_ref[...], 0.0)
    h = jnp.maximum(
        jnp.dot(h.astype(jnp.bfloat16), w3_ref[...],
                preferred_element_type=jnp.float32) + b3_ref[...], 0.0)
    # Layer 4: per-critic (H, 1) heads folded into one (Hf, OP) bf16 matmul;
    # output is lane-dense (128 lanes), critics occupy the first C lanes.
    out_ref[...] = (jnp.dot(h.astype(jnp.bfloat16), w4_ref[...],
                            preferred_element_type=jnp.float32) + b4_ref[...])


def init_critic_ensemble_params(key, n_critics, obs_dim, act_dim, hidden_size):
    """PyTorch nn.Linear default init (U[-1/sqrt(fan_in), 1/sqrt(fan_in)]), per critic."""
    D = obs_dim + act_dim
    H = hidden_size
    dims = [(D, H), (H, H), (H, H), (H, 1)]
    params = {}
    for li, (fan_in, fan_out) in enumerate(dims, start=1):
        key, kw, kb = jax.random.split(key, 3)
        bound = 1.0 / jnp.sqrt(float(fan_in))
        params[f"w{li}"] = jax.random.uniform(
            kw, (n_critics, fan_in, fan_out), jnp.float32, -bound, bound)
        params[f"b{li}"] = jax.random.uniform(
            kb, (n_critics, 1, fan_out), jnp.float32, -bound, bound)
    return params


def fuse_critic_params(params, obs_dim):
    """Fuse per-critic weights into lane-packed / block-diagonal padded slabs.

    Done once outside the forward path. Padding rows/columns are zero, so
    padded hidden units stay exactly 0 through ReLU and do not affect results.
    Weights are stored in bf16 (MXU-native); biases stay f32 (added post-MXU).
    """
    w1, b1 = params["w1"], params["b1"]   # (C, D, H), (C, 1, H)
    w2, b2 = params["w2"], params["b2"]   # (C, H, H), (C, 1, H)
    w3, b3 = params["w3"], params["b3"]   # (C, H, H), (C, 1, H)
    w4, b4 = params["w4"], params["b4"]   # (C, H, 1), (C, 1, 1)
    C, D, H = w1.shape
    CH = C * H
    if CH > 256:
        # Beyond one (v6e/v7x) / two (v5e) MXU quanta the (C*H)^2 zero padding
        # of the block-diagonal fusion becomes real MXU passes and real VMEM;
        # a per-critic grid axis (grid=(C, nb)) is the right structure there.
        raise NotImplementedError(
            "fused critic path supports n_critics*hidden <= 256; "
            "use a per-critic grid axis for larger ensembles")
    Hf = _round_up(CH, 128)               # fused hidden width, padded to a full lane tile
    OP = _round_up(C, 128)                # lane-dense output width

    def pad2(m, rows, cols):
        return jnp.pad(m, ((0, rows - m.shape[0]), (0, cols - m.shape[1])))

    # (C, D, H) -> (D, C*H): column c*H + h belongs to critic c.
    w1_f = pad2(jnp.transpose(w1, (1, 0, 2)).reshape(D, CH), D, Hf)
    wt = jnp.bfloat16   # MXU-native weight dtype
    ft = jnp.float32
    fused = {
        "w1x": w1_f[:obs_dim].astype(wt),                               # (obs, Hf)
        "w1a": w1_f[obs_dim:].astype(wt),                               # (act, Hf)
        "b1": pad2(b1.reshape(1, CH), 1, Hf).astype(ft),
        "w2": pad2(block_diag(*[w2[c] for c in range(C)]), Hf, Hf).astype(wt),
        "b2": pad2(b2.reshape(1, CH), 1, Hf).astype(ft),
        "w3": pad2(block_diag(*[w3[c] for c in range(C)]), Hf, Hf).astype(wt),
        "b3": pad2(b3.reshape(1, CH), 1, Hf).astype(ft),
        "w4": pad2(block_diag(*[w4[c] for c in range(C)]), Hf, OP).astype(wt),
        "b4": pad2(b4.reshape(1, C), 1, OP).astype(ft),
    }
    return fused, C


def _pick_batch_tiling(B):
    """Choose (padded_batch, tile, n_tiles).

    Large tiles amortize the ~0.35us per-grid-step overhead; nb >= 2 whenever
    the (sublane-padded) batch exceeds 256 so both v7x TensorCores get work
    via the 'parallel' grid axis (costs nothing on 1-TC v5e/v6e).
    """
    Bp = _round_up(B, 8)                      # sublane-align the batch
    if Bp <= 256:
        return Bp, Bp, 1
    nb = max(2, pl.cdiv(Bp, 1024))            # tiles <= ~1024 rows, >= 2 tiles
    TB = _round_up(pl.cdiv(Bp, nb), 8)
    nb = pl.cdiv(Bp, TB)
    return TB * nb, TB, nb


def critic_ensemble_forward(x, a, fused, n_critics):
    """x: (B, obs_dim), a: (B, act_dim) -> (n_critics, B, 1) float32."""
    B, obs_dim = x.shape
    act_dim = a.shape[1]
    x = x.astype(jnp.bfloat16)
    a = a.astype(jnp.bfloat16)
    Hf = fused["w2"].shape[0]
    OP = fused["w4"].shape[1]

    Bp, TB, nb = _pick_batch_tiling(B)
    if Bp != B:
        x = jnp.pad(x, ((0, Bp - B), (0, 0)))
        a = jnp.pad(a, ((0, Bp - B), (0, 0)))

    flops = 2 * Bp * ((obs_dim + act_dim) * Hf + 2 * Hf * Hf + Hf * OP)
    bytes_accessed = (2 * Bp * (obs_dim + act_dim)                       # bf16 inputs
                      + 2 * ((obs_dim + act_dim) * Hf + 2 * Hf * Hf + Hf * OP)  # bf16 weights
                      + 4 * (3 * Hf + OP)                                # f32 biases
                      + 4 * Bp * OP)                                     # f32 output

    def resident(shape):
        # Constant index_map: the weight block never changes across batch
        # tiles, so it is DMA'd once and stays resident in VMEM.
        return pl.BlockSpec(shape, lambda i: (0,) * len(shape))

    out = pl.pallas_call(
        _critic_kernel,
        out_shape=jax.ShapeDtypeStruct((Bp, OP), jnp.float32),
        grid=(nb,),
        in_specs=[
            pl.BlockSpec((TB, obs_dim), lambda i: (i, 0)),   # x batch tile
            pl.BlockSpec((TB, act_dim), lambda i: (i, 0)),   # a batch tile
            resident((obs_dim, Hf)), resident((act_dim, Hf)), resident((1, Hf)),  # fc1
            resident((Hf, Hf)), resident((1, Hf)),                                # fc2
            resident((Hf, Hf)), resident((1, Hf)),                                # fc3
            resident((Hf, OP)), resident((1, OP)),                                # fc4
        ],
        out_specs=pl.BlockSpec((TB, OP), lambda i: (i, 0)),
        compiler_params=pltpu.CompilerParams(
            dimension_semantics=("parallel",)),
        cost_estimate=pl.CostEstimate(
            flops=flops, transcendentals=0, bytes_accessed=bytes_accessed),
    )(x, a,
      fused["w1x"], fused["w1a"], fused["b1"],
      fused["w2"], fused["b2"],
      fused["w3"], fused["b3"],
      fused["w4"], fused["b4"])

    q = out[:B, :n_critics]                 # (B, C): first C lanes, real rows only
    return jnp.transpose(q)[:, :, None]     # (C, B, 1), matches torch.stack over critics


def _reference_forward(x, a, params):
    xa = jnp.concatenate([x, a], axis=1)

    def one_critic(w1, b1, w2, b2, w3, b3, w4, b4):
        h = jax.nn.relu(xa @ w1 + b1)
        h = jax.nn.relu(h @ w2 + b2)
        h = jax.nn.relu(h @ w3 + b3)
        return h @ w4 + b4

    return jax.vmap(one_critic)(
        params["w1"], params["b1"], params["w2"], params["b2"],
        params["w3"], params["b3"], params["w4"], params["b4"])


if __name__ == "__main__":
    key = jax.random.PRNGKey(0)
    n_critics = 3
    obs_dim = 12
    act_dim = 4
    hidden = 32

    k_params, k_x, k_a = jax.random.split(key, 3)
    params = init_critic_ensemble_params(k_params, n_critics, obs_dim, act_dim, hidden)
    fused, C = fuse_critic_params(params, obs_dim)

    # Small demo batch (single grid step).
    batch = 8
    x = jax.random.normal(k_x, (batch, obs_dim), jnp.float32)
    a = jax.random.normal(k_a, (batch, act_dim), jnp.float32)
    out = jax.block_until_ready(critic_ensemble_forward(x, a, fused, C))
    ref = _reference_forward(x, a, params)
    assert out.shape == (n_critics, batch, 1), out.shape
    # bf16 matmul path -> loosen the fp32 tolerance.
    assert jnp.allclose(out, ref, atol=3e-2, rtol=3e-2), "mismatch vs reference (small batch)"

    # Second check exercising the multi-tile (padded, nb >= 2) path.
    batch2 = 300
    k_x2, k_a2 = jax.random.split(k_x)
    x2 = jax.random.normal(k_x2, (batch2, obs_dim), jnp.float32)
    a2 = jax.random.normal(k_a2, (batch2, act_dim), jnp.float32)
    out2 = jax.block_until_ready(critic_ensemble_forward(x2, a2, fused, C))
    ref2 = _reference_forward(x2, a2, params)
    assert out2.shape == (n_critics, batch2, 1), out2.shape
    assert jnp.allclose(out2, ref2, atol=3e-2, rtol=3e-2), "mismatch vs reference (tiled batch)"

    print("KERNEL_OK")
</pallas_src>

<mosaic_0001>
module attributes {stable_mosaic.version = 11 : i64} {
  func.func @_critic_kernel(%arg0: i32, %arg1: memref<8x12xbf16, #tpu.memory_space<vmem>>, %arg2: memref<8x4xbf16, #tpu.memory_space<vmem>>, %arg3: memref<12x128xbf16, #tpu.memory_space<vmem>>, %arg4: memref<4x128xbf16, #tpu.memory_space<vmem>>, %arg5: memref<1x128xf32, #tpu.memory_space<vmem>>, %arg6: memref<128x128xbf16, #tpu.memory_space<vmem>>, %arg7: memref<1x128xf32, #tpu.memory_space<vmem>>, %arg8: memref<128x128xbf16, #tpu.memory_space<vmem>>, %arg9: memref<1x128xf32, #tpu.memory_space<vmem>>, %arg10: memref<128x128xbf16, #tpu.memory_space<vmem>>, %arg11: memref<1x128xf32, #tpu.memory_space<vmem>>, %arg12: memref<8x128xf32, #tpu.memory_space<vmem>>) attributes {dimension_semantics = [#tpu.dimension_semantics<parallel>], iteration_bounds = array<i64: 1>, scalar_prefetch = 0 : i64, scratch_operands = 0 : i64, tpu.core_type = #tpu.core_type<tc>, window_params = [{transform_indices = @transform_0, window_bounds = array<i64: 8, 12>}, {transform_indices = @transform_1, window_bounds = array<i64: 8, 4>}, {pipeline_mode = #tpu.pipeline_mode<synchronous>, transform_indices = @transform_2, window_bounds = array<i64: 12, 128>}, {pipeline_mode = #tpu.pipeline_mode<synchronous>, transform_indices = @transform_3, window_bounds = array<i64: 4, 128>}, {pipeline_mode = #tpu.pipeline_mode<synchronous>, transform_indices = @transform_4, window_bounds = array<i64: 1, 128>}, {pipeline_mode = #tpu.pipeline_mode<synchronous>, transform_indices = @transform_5, window_bounds = array<i64: 128, 128>}, {pipeline_mode = #tpu.pipeline_mode<synchronous>, transform_indices = @transform_6, window_bounds = array<i64: 1, 128>}, {pipeline_mode = #tpu.pipeline_mode<synchronous>, transform_indices = @transform_7, window_bounds = array<i64: 128, 128>}, {pipeline_mode = #tpu.pipeline_mode<synchronous>, transform_indices = @transform_8, window_bounds = array<i64: 1, 128>}, {pipeline_mode = #tpu.pipeline_mode<synchronous>, transform_indices = @transform_9, window_bounds = array<i64: 128, 128>}, {pipeline_mode = #tpu.pipeline_mode<synchronous>, transform_indices = @transform_10, window_bounds = array<i64: 1, 128>}, {transform_indices = @transform_11, window_bounds = array<i64: 8, 128>}]} {
    %c0 = arith.constant 0 : index
    %c0_0 = arith.constant 0 : index
    %0 = vector.load %arg1[%c0, %c0_0] : memref<8x12xbf16, #tpu.memory_space<vmem>>, vector<8x12xbf16>
    %c0_1 = arith.constant 0 : index
    %c0_2 = arith.constant 0 : index
    %1 = vector.load %arg3[%c0_1, %c0_2] : memref<12x128xbf16, #tpu.memory_space<vmem>>, vector<12x128xbf16>
    %cst = arith.constant dense<0.000000e+00> : vector<8x128xf32>
    %2 = tpu.matmul %0, %1, %cst {dimension_numbers = #tpu.dot_dimension_numbers<[1], [0], [0], [1], [0, 0, 1, 1], [], []>} : vector<8x12xbf16>, vector<12x128xbf16>, vector<8x128xf32> -> vector<8x128xf32>
    %c0_3 = arith.constant 0 : index
    %c0_4 = arith.constant 0 : index
    %3 = vector.load %arg2[%c0_3, %c0_4] : memref<8x4xbf16, #tpu.memory_space<vmem>>, vector<8x4xbf16>
    %c0_5 = arith.constant 0 : index
    %c0_6 = arith.constant 0 : index
    %4 = vector.load %arg4[%c0_5, %c0_6] : memref<4x128xbf16, #tpu.memory_space<vmem>>, vector<4x128xbf16>
    %cst_7 = arith.constant dense<0.000000e+00> : vector<8x128xf32>
    %5 = tpu.matmul %3, %4, %cst_7 {dimension_numbers = #tpu.dot_dimension_numbers<[1], [0], [0], [1], [0, 0, 1, 1], [], []>} : vector<8x4xbf16>, vector<4x128xbf16>, vector<8x128xf32> -> vector<8x128xf32>
    %6 = arith.addf %2, %5 : vector<8x128xf32>
    %c0_8 = arith.constant 0 : index
    %c0_9 = arith.constant 0 : index
    %7 = vector.load %arg5[%c0_8, %c0_9] : memref<1x128xf32, #tpu.memory_space<vmem>>, vector<1x128xf32>
    %8 = vector.broadcast %7 : vector<1x128xf32> to vector<8x128xf32>
    %9 = arith.addf %6, %8 : vector<8x128xf32>
    %cst_10 = arith.constant 0.000000e+00 : f32
    %10 = vector.broadcast %cst_10 : f32 to vector<8x128xf32>
    %11 = arith.maximumf %9, %10 : vector<8x128xf32>
    %12 = arith.truncf %11 : vector<8x128xf32> to vector<8x128xbf16>
    %c0_11 = arith.constant 0 : index
    %c0_12 = arith.constant 0 : index
    %13 = vector.load %arg6[%c0_11, %c0_12] : memref<128x128xbf16, #tpu.memory_space<vmem>>, vector<128x128xbf16>
    %cst_13 = arith.constant dense<0.000000e+00> : vector<8x128xf32>
    %14 = tpu.matmul %12, %13, %cst_13 {dimension_numbers = #tpu.dot_dimension_numbers<[1], [0], [0], [1], [0, 0, 1, 1], [], []>} : vector<8x128xbf16>, vector<128x128xbf16>, vector<8x128xf32> -> vector<8x128xf32>
    %c0_14 = arith.constant 0 : index
    %c0_15 = arith.constant 0 : index
    %15 = vector.load %arg7[%c0_14, %c0_15] : memref<1x128xf32, #tpu.memory_space<vmem>>, vector<1x128xf32>
    %16 = vector.broadcast %15 : vector<1x128xf32> to vector<8x128xf32>
    %17 = arith.addf %14, %16 : vector<8x128xf32>
    %cst_16 = arith.constant 0.000000e+00 : f32
    %18 = vector.broadcast %cst_16 : f32 to vector<8x128xf32>
    %19 = arith.maximumf %17, %18 : vector<8x128xf32>
    %20 = arith.truncf %19 : vector<8x128xf32> to vector<8x128xbf16>
    %c0_17 = arith.constant 0 : index
    %c0_18 = arith.constant 0 : index
    %21 = vector.load %arg8[%c0_17, %c0_18] : memref<128x128xbf16, #tpu.memory_space<vmem>>, vector<128x128xbf16>
    %cst_19 = arith.constant dense<0.000000e+00> : vector<8x128xf32>
    %22 = tpu.matmul %20, %21, %cst_19 {dimension_numbers = #tpu.dot_dimension_numbers<[1], [0], [0], [1], [0, 0, 1, 1], [], []>} : vector<8x128xbf16>, vector<128x128xbf16>, vector<8x128xf32> -> vector<8x128xf32>
    %c0_20 = arith.constant 0 : index
    %c0_21 = arith.constant 0 : index
    %23 = vector.load %arg9[%c0_20, %c0_21] : memref<1x128xf32, #tpu.memory_space<vmem>>, vector<1x128xf32>
    %24 = vector.broadcast %23 : vector<1x128xf32> to vector<8x128xf32>
    %25 = arith.addf %22, %24 : vector<8x128xf32>
    %cst_22 = arith.constant 0.000000e+00 : f32
    %26 = vector.broadcast %cst_22 : f32 to vector<8x128xf32>
    %27 = arith.maximumf %25, %26 : vector<8x128xf32>
    %28 = arith.truncf %27 : vector<8x128xf32> to vector<8x128xbf16>
    %c0_23 = arith.constant 0 : index
    %c0_24 = arith.constant 0 : index
    %29 = vector.load %arg10[%c0_23, %c0_24] : memref<128x128xbf16, #tpu.memory_space<vmem>>, vector<128x128xbf16>
    %cst_25 = arith.constant dense<0.000000e+00> : vector<8x128xf32>
    %30 = tpu.matmul %28, %29, %cst_25 {dimension_numbers = #tpu.dot_dimension_numbers<[1], [0], [0], [1], [0, 0, 1, 1], [], []>} : vector<8x128xbf16>, vector<128x128xbf16>, vector<8x128xf32> -> vector<8x128xf32>
    %c0_26 = arith.constant 0 : index
    %c0_27 = arith.constant 0 : index
    %31 = vector.load %arg11[%c0_26, %c0_27] : memref<1x128xf32, #tpu.memory_space<vmem>>, vector<1x128xf32>
    %32 = vector.broadcast %31 : vector<1x128xf32> to vector<8x128xf32>
    %33 = arith.addf %30, %32 : vector<8x128xf32>
    %c0_28 = arith.constant 0 : index
    %c0_29 = arith.constant 0 : index
    %34 = vector.load %arg12[%c0_28, %c0_29] : memref<8x128xf32, #tpu.memory_space<vmem>>, vector<8x128xf32>
    tpu.vector_store %arg12[%c0_28, %c0_29], %33 {strides = array<i32>} : memref<8x128xf32, #tpu.memory_space<vmem>>, vector<8x128xf32>,
    return
  }
  func.func @transform_0(%arg0: i32) -> (i32, i32) {
    %c0_i32 = arith.constant 0 : i32
    %c0_i32_0 = arith.constant 0 : i32
    return %arg0, %c0_i32 : i32, i32
  }
  func.func @transform_1(%arg0: i32) -> (i32, i32) {
    %c0_i32 = arith.constant 0 : i32
    %c0_i32_0 = arith.constant 0 : i32
    return %arg0, %c0_i32 : i32, i32
  }
  func.func @transform_2(%arg0: i32) -> (i32, i32) {
    %c0_i32 = arith.constant 0 : i32
    %c0_i32_0 = arith.constant 0 : i32
    %c0_i32_1 = arith.constant 0 : i32
    return %c0_i32, %c0_i32_0 : i32, i32
  }
  func.func @transform_3(%arg0: i32) -> (i32, i32) {
    %c0_i32 = arith.constant 0 : i32
    %c0_i32_0 = arith.constant 0 : i32
    %c0_i32_1 = arith.constant 0 : i32
    return %c0_i32, %c0_i32_0 : i32, i32
  }
  func.func @transform_4(%arg0: i32) -> (i32, i32) {
    %c0_i32 = arith.constant 0 : i32
    %c0_i32_0 = arith.constant 0 : i32
    %c0_i32_1 = arith.constant 0 : i32
    return %c0_i32, %c0_i32_0 : i32, i32
  }
  func.func @transform_5(%arg0: i32) -> (i32, i32) {
    %c0_i32 = arith.constant 0 : i32
    %c0_i32_0 = arith.constant 0 : i32
    %c0_i32_1 = arith.constant 0 : i32
    return %c0_i32, %c0_i32_0 : i32, i32
  }
  func.func @transform_6(%arg0: i32) -> (i32, i32) {
    %c0_i32 = arith.constant 0 : i32
    %c0_i32_0 = arith.constant 0 : i32
    %c0_i32_1 = arith.constant 0 : i32
    return %c0_i32, %c0_i32_0 : i32, i32
  }
  func.func @transform_7(%arg0: i32) -> (i32, i32) {
    %c0_i32 = arith.constant 0 : i32
    %c0_i32_0 = arith.constant 0 : i32
    %c0_i32_1 = arith.constant 0 : i32
    return %c0_i32, %c0_i32_0 : i32, i32
  }
  func.func @transform_8(%arg0: i32) -> (i32, i32) {
    %c0_i32 = arith.constant 0 : i32
    %c0_i32_0 = arith.constant 0 : i32
    %c0_i32_1 = arith.constant 0 : i32
    return %c0_i32, %c0_i32_0 : i32, i32
  }
  func.func @transform_9(%arg0: i32) -> (i32, i32) {
    %c0_i32 = arith.constant 0 : i32
    %c0_i32_0 = arith.constant 0 : i32
    %c0_i32_1 = arith.constant 0 : i32
    return %c0_i32, %c0_i32_0 : i32, i32
  }
  func.func @transform_10(%arg0: i32) -> (i32, i32) {
    %c0_i32 = arith.constant 0 : i32
    %c0_i32_0 = arith.constant 0 : i32
    %c0_i32_1 = arith.constant 0 : i32
    return %c0_i32, %c0_i32_0 : i32, i32
  }
  func.func @transform_11(%arg0: i32) -> (i32, i32) {
    %c0_i32 = arith.constant 0 : i32
    %c0_i32_0 = arith.constant 0 : i32
    return %arg0, %c0_i32 : i32, i32
  }
}

</mosaic_0001>

<bundles_post_ra>
// kernel: tpu_custom_call.1
= control target key start
LH: loop header
LB: loop body
LE: loop exit
PB: predicated region body
PF: predicated region fallthrough
CT: control target
= control target key end

     0   :  { %16 = vsyncpa [#allocation3], 0  ;;  %s990_s0 = inlined_call_operand.hbm [shape: bf16[8,12], index: 0, kind: input, shape index: {}]   ;;  %s991_s1 = inlined_call_operand.vmem [shape: bf16[8,4], index: 1, kind: input, shape index: {}]   ;;  %s992_s2 = inlined_call_operand.vmem [shape: bf16[12,128], index: 2, kind: input, shape index: {}]   ;;  %s993_s3 = inlined_call_operand.vmem [shape: bf16[4,128], index: 3, kind: input, shape index: {}]   ;;  %s994_s4 = inlined_call_operand.vmem [shape: f32[1,128], index: 4, kind: input, shape index: {}]   ;;  %s995_s5 = inlined_call_operand.hbm [shape: bf16[128,128], index: 5, kind: input, shape index: {}]   ;;  %s996_s6 = inlined_call_operand.vmem [shape: f32[1,128], index: 6, kind: input, shape index: {}]   ;;  %s997_s7 = inlined_call_operand.hbm [shape: bf16[128,128], index: 7, kind: input, shape index: {}]   ;;  %s998_s8 = inlined_call_operand.vmem [shape: f32[1,128], index: 8, kind: input, shape index: {}]   ;;  %s999_s9 = inlined_call_operand.hbm [shape: bf16[128,128], index: 9, kind: input, shape index: {}]   ;;  %s1000_s10 = inlined_call_operand.vmem [shape: f32[1,128], index: 10, kind: input, shape index: {}]   ;;  %s1001_s11 = inlined_call_operand.hbm [shape: f32[8,128], index: 11, kind: output, shape index: {}]  }
   0x1   :  { %17 = vsyncpa [#allocation6], 0 }
   0x2   :  { %18 = vsyncpa [#allocation9], 0 }
   0x3   :  { %19 = vsyncpa [#allocation4], 0  ;;  %s840_s17 = smov [#allocation5]  }
   0x4   :  { %s43_s18 = sshll.u32 %s840_s17, 4  ;;  %s44_s18 = int_to_ptr.vmem [resolvable:$true] %s43_s18 }
   0x5   :  { %s740_s19 = scalar_lea.vmem %s44_s18, 1024  ;;  %p745_p1 = scmp.lt.s32.totalorder %s44_s18, %s44_s18 }
   0x6   :  { %p741_p0 = scmp.ne.s32.totalorder %s44_s18, %s740_s19  ;;  %p746_p2 = scmp.lt.s32.totalorder %s740_s19, %s740_s19 }
   0x8   :  { %p747_p3 = por %p746_p2, %p745_p1 }
   0xa   :  { %p748_p4 = pnand %p747_p3, %p741_p0 }
   0xc   :  { %751 = shalt.err (!%p748_p4)
}
   0xd   :  { %s841_s20 = smov 64   ;;  %s842_s21 = smov 4  }
   0xe   :  { %49 = dma.hbm_to_vmem [thread:$0]  %s995_s5, 1024, %s44_s18, [#allocation6], %s841_s20, %s841_s20, %s842_s21  }
   0xf   :  { %s843_s24 = smov [#allocation2]   ;;  %s844_s26 = smov [#allocation7]  }
  0x10   :  { %s26_s25 = sshll.u32 %s843_s24, 4  ;;  %s57_s27 = sshll.u32 %s844_s26, 4  ;;  %s27_s25 = int_to_ptr.vmem [resolvable:$true] %s26_s25  ;;  %s58_s27 = int_to_ptr.vmem [resolvable:$true] %s57_s27 }
  0x11   :  { %s760_s28 = scalar_lea.vmem %s27_s25, 64  ;;  %p765_p6 = scmp.lt.s32.totalorder %s27_s25, %s27_s25 }
  0x12   :  { %p761_p5 = scmp.ne.s32.totalorder %s27_s25, %s760_s28  ;;  %p766_p7 = scmp.lt.s32.totalorder %s760_s28, %s760_s28 }
  0x14   :  { %p767_p8 = por %p766_p7, %p765_p6 }
  0x16   :  { %p768_p9 = pnand %p767_p8, %p761_p5 }
  0x18   :  { %771 = shalt.err (!%p768_p9)
}
  0x19   :  { %29 = dma.hbm_to_vmem [thread:$0]  %s990_s0, 64, %s27_s25, [#allocation3]  }
  0x1a   :  { %s780_s12 = scalar_lea.vmem %s58_s27, 1024  ;;  %p785_p11 = scmp.lt.s32.totalorder %s58_s27, %s58_s27 }
  0x1b   :  { %p781_p10 = scmp.ne.s32.totalorder %s58_s27, %s780_s12  ;;  %p786_p12 = scmp.lt.s32.totalorder %s780_s12, %s780_s12 }
  0x1d   :  { %p787_p13 = por %p786_p12, %p785_p11 }
  0x1f   :  { %p788_p0 = pnand %p787_p13, %p781_p10 }
  0x21   :  { %791 = shalt.err (!%p788_p0)
}
  0x22   :  { %63 = dma.hbm_to_vmem [thread:$0]  %s997_s7, 1024, %s58_s27, [#allocation6], %s841_s20, %s841_s20, %s842_s21  }
  0x23   :  { %s845_s14 = smov [#allocation8]  }
  0x24   :  { %s71_s15 = sshll.u32 %s845_s14, 4  ;;  %s72_s15 = int_to_ptr.vmem [resolvable:$true] %s71_s15 }
  0x25   :  { %s800_s16 = scalar_lea.vmem %s72_s15, 1024  ;;  %p805_p2 = scmp.lt.s32.totalorder %s72_s15, %s72_s15 }
  0x26   :  { %p801_p1 = scmp.ne.s32.totalorder %s72_s15, %s800_s16  ;;  %p806_p3 = scmp.lt.s32.totalorder %s800_s16, %s800_s16 }
  0x28   :  { %p807_p4 = por %p806_p3, %p805_p2 }
  0x2a   :  { %p808_p5 = pnand %p807_p4, %p801_p1 }
  0x2c   :  { %811 = shalt.err (!%p808_p5)
}
  0x2d   :  { %77 = dma.hbm_to_vmem [thread:$0]  %s999_s9, 1024, %s72_s15, [#allocation9], %s841_s20, %s841_s20, %s842_s21  }
  0x2e   :  { %832 = dma.done.wait [#allocation3], 64  }
  0x2f   :  { %833 = vsyncadd [#allocation3], 4294967232 }
  0x30   :  { %834 = dma.done.wait [#allocation6], 2048  }
  0x31   :  { %835 = vsyncadd [#allocation6], 4294965248 }
  0x32   :  { %836 = dma.done.wait [#allocation9], 1024  }
  0x33   :  { %837 = vsyncadd [#allocation9], 4294966272  ;;  %v846_v0 = vmov 0.0   ;;  %vm847_vm0 = vmmov 0   ;;  %vm102_vm1 = vcmask 1041408   ;;  %vm98_vm2 = vcmask 31744  }
  0x34   :  { %626 = vmatprep.subr.bf16.mxu1 %v846_v0  ;;  %628 = vmatprep.mubr.msk.bf16.mxu1 %vm847_vm0, %v846_v0  ;;  %v97_v1 = vld [vmem:[%s993_s3] sm:$0x3]  ;;  %vm155_vm3 = vcmask 1045504   ;;  %v709_v7 = vld [vmem:[#allocation5 + $0x30] sm:$0xff]   ;;  %vm151_vm4 = vcmask 97280   ;;  %v710_v8 = vld [vmem:[#allocation5 + $0x28] sm:$0xff]  }
  0x35   :  { %638 = vmatprep.subr.bf16.mxu0 %v846_v0  ;;  %654 = vmatprep.mubr.msk.bf16.mxu0 %vm847_vm0, %v846_v0  ;;  %v104_v2 = vsel %vm102_vm1, %v97_v1, 0  ;;  %v707_v3 = vld [vmem:[%s992_s2] sm:$0x3f]   ;;  %v713_v12 = vld [vmem:[#allocation5 + $0x10] sm:$0xff]   ;;  %v714_v13 = vld [vmem:[#allocation5 + $0x8] sm:$0xff]   ;;  %s848_s25 = smov [#allocation10]  }
  0x36   :  { %v708_v4 = vld [vmem:[#allocation5 + $0x38] sm:$0xff]   ;;  %627 = vmatpush3.bf16.msra.mxu1 %v104_v2  ;;  %v157_v6 = vsel %vm155_vm3, %v707_v3, 0  ;;  %v711_v10 = vld [vmem:[#allocation5 + $0x20] sm:$0xff]   ;;  %v717_v16 = vld [vmem:[#allocation7 + $0x30] sm:$0xff]   ;;  %s553_s26 = sshll.u32 %s848_s25, 4  ;;  %s554_s26 = int_to_ptr.vmem [resolvable:$true] %s553_s26 }
  0x37   :  { %v96_v5 = vld [vmem:[%s991_s1] sm:$0xf]  ;;  %632 = vmatprep.subr.bf16.mxu1 %v846_v0  ;;  %639 = vmatpush3.bf16.msra.mxu0 %v708_v4  ;;  %v715_v14 = vld [vmem:[#allocation5] sm:$0xff]   ;;  %v718_v17 = vld [vmem:[#allocation7 + $0x28] sm:$0xff]   ;;  %p817_p7 = scmp.lt.s32.totalorder %s554_s26, %s554_s26 }
  0x38   :  { %640 = vmatprep.subr.bf16.mxu0 %v846_v0  ;;  %v93_v9 = vld [vmem:[#allocation2] sm:$0xf]  ;;  %v719_v18 = vld [vmem:[#allocation7 + $0x20] sm:$0xff]   ;;  %v721_v20 = vld [vmem:[#allocation7 + $0x10] sm:$0xff]  }
  0x39   :  { %629 = vmatmul.mubr.msk.bf16.vlgmr.msra.gmra.mxu1 %vm98_vm2, %v96_v5  ;;  %v712_v11 = vld [vmem:[#allocation5 + $0x18] sm:$0xff]   ;;  %v722_v34 = vld [vmem:[#allocation7 + $0x8] sm:$0xff]   ;;  %v723_v35 = vld [vmem:[#allocation7] sm:$0xff]  }
  0x3a   :  { %633 = vmatpush3.bf16.msra.mxu1 %v157_v6  ;;  %634 = vmatprep.mubr.msk.bf16.mxu1 %vm847_vm0, %v846_v0  ;;  %v716_v15 = vld [vmem:[#allocation7 + $0x38] sm:$0xff]   ;;  %v725_v37 = vld [vmem:[#allocation8 + $0x30] sm:$0xff]   ;;  %v726_v38 = vld [vmem:[#allocation8 + $0x28] sm:$0xff]  }
  0x3b   :  { %641 = vmatpush3.bf16.msra.mxu0 %v709_v7  ;;  %658 = vmatprep.subr.bf16.mxu1 %v846_v0  ;;  %v720_v19 = vld [vmem:[#allocation7 + $0x18] sm:$0xff]   ;;  %v727_v39 = vld [vmem:[#allocation8 + $0x20] sm:$0xff]   ;;  %v729_v41 = vld [vmem:[#allocation8 + $0x10] sm:$0xff]  }
  0x3c   :  { %642 = vmatprep.subr.bf16.mxu0 %v846_v0  ;;  %v567_v26 = vld [vmem:[%s994_s4] ss:$0 sm:$0xff]  ;;  %v730_v50 = vld [vmem:[#allocation8 + $0x8] sm:$0xff]   ;;  %v731_v51 = vld [vmem:[#allocation8] sm:$0xff]  }
  0x3d   :  { %v724_v36 = vld [vmem:[#allocation8 + $0x38] sm:$0xff]  }
  0x3e   :  { %v728_v40 = vld [vmem:[#allocation8 + $0x18] sm:$0xff]  }
  0x3f   :  { %643 = vmatpush3.bf16.msra.mxu0 %v710_v8  ;;  %v568_v42 = vld [vmem:[%s996_s6] ss:$0 sm:$0xff] }
  0x40   :  { %644 = vmatprep.subr.bf16.mxu0 %v846_v0  ;;  %v577_v52 = vld [vmem:[%s998_s8] ss:$0 sm:$0xff]  ;;  %s812_s8 = scalar_lea.vmem %s554_s26, 128 }
  0x41   :  { %635 = vmatmul.mubr.msk.bf16.vlgmr.msra.gmra.mxu1 %vm151_vm4, %v93_v9  ;;  %v586_v60 = vld [vmem:[%s1000_s10] ss:$0 sm:$0xff]  ;;  %p813_p6 = scmp.ne.s32.totalorder %s554_s26, %s812_s8  ;;  %p818_p8 = scmp.lt.s32.totalorder %s812_s8, %s812_s8 }
  0x42   :  { %674 = vmatprep.mubr.msk.bf16.mxu1 %vm847_vm0, %v846_v0  ;;  %659 = vmatpush3.bf16.msra.mxu1 %v716_v15 }
  0x43   :  { %645 = vmatpush3.bf16.msra.mxu0 %v711_v10  ;;  %660 = vmatprep.subr.bf16.mxu1 %v846_v0  ;;  %p819_p9 = por %p818_p8, %p817_p7 }
  0x44   :  { %646 = vmatprep.subr.bf16.mxu0 %v846_v0 }
  0x45   :  { %p820_p10 = pnand %p819_p9, %p813_p6 }
  0x46   :  { %661 = vmatpush3.bf16.msra.mxu1 %v717_v16 }
  0x47   :  { %647 = vmatpush3.bf16.msra.mxu0 %v712_v11  ;;  %662 = vmatprep.subr.bf16.mxu1 %v846_v0 }
  0x48   :  { %648 = vmatprep.subr.bf16.mxu0 %v846_v0 }
  0x4a   :  { %663 = vmatpush3.bf16.msra.mxu1 %v718_v17 }
  0x4b   :  { %649 = vmatpush3.bf16.msra.mxu0 %v713_v12  ;;  %664 = vmatprep.subr.bf16.mxu1 %v846_v0 }
  0x4c   :  { %650 = vmatprep.subr.bf16.mxu0 %v846_v0 }
  0x4e   :  { %665 = vmatpush3.bf16.msra.mxu1 %v719_v18 }
  0x4f   :  { %651 = vmatpush3.bf16.msra.mxu0 %v714_v13  ;;  %666 = vmatprep.subr.bf16.mxu1 %v846_v0 }
  0x50   :  { %652 = vmatprep.subr.bf16.mxu0 %v846_v0 }
  0x52   :  { %667 = vmatpush3.bf16.msra.mxu1 %v720_v19 }
  0x53   :  { %653 = vmatpush3.bf16.msra.mxu0 %v715_v14  ;;  %668 = vmatprep.subr.bf16.mxu1 %v846_v0 }
  0x54   :  { %678 = vmatprep.subr.bf16.mxu0 %v846_v0 }
  0x56   :  { %669 = vmatpush3.bf16.msra.mxu1 %v721_v20 }
  0x57   :  { %670 = vmatprep.subr.bf16.mxu1 %v846_v0 }
  0x5a   :  { %671 = vmatpush3.bf16.msra.mxu1 %v722_v34 }
  0x5b   :  { %672 = vmatprep.subr.bf16.mxu1 %v846_v0 }
  0x5e   :  { %673 = vmatpush3.bf16.msra.mxu1 %v723_v35 }
  0xf9   :  { %v140_v21 = vpop.f32.mrf.mxu1 }
  0xfb   :  { %v630_v22 = vpop.f32.mrf.mxu1 }
  0xfd   :  { %v143_v23 = vpop.f32.mrf.mxu1 }
  0xff   :  { %v631_v24 = vpop.f32.mrf.mxu1 }
 0x101   :  { %v193_v25 = vpop.f32.mrf.mxu1 }
 0x102   :  { %v194_v27 = vadd.f32 %v193_v25, %v140_v21 }
 0x103   :  { %v636_v28 = vpop.f32.mrf.mxu1 }
 0x104   :  { %v206_v29 = vadd.f32 %v567_v26, %v194_v27 }
 0x105   :  { %v196_v30 = vpop.f32.mrf.mxu1 }
 0x106   :  { %v207_v31 = vmax.f32 %v206_v29, 0.0 }
 0x107   :  { %v637_v32 = vpop.f32.mrf.mxu1 }
 0x108   :  { %v208_v33 = vpack.c.bf16 %v207_v31, %v207_v31 }
 0x10a   :  { %655 = vmatmul.mubr.bf16.vlgmr.msra.gmra.mxu0 %v208_v33 }
 0x10b   :  { %694 = vmatprep.mubr.msk.bf16.mxu0 %vm847_vm0, %v846_v0  ;;  %679 = vmatpush3.bf16.msra.mxu0 %v724_v36 }
 0x10c   :  { %680 = vmatprep.subr.bf16.mxu0 %v846_v0 }
 0x10f   :  { %681 = vmatpush3.bf16.msra.mxu0 %v725_v37 }
 0x110   :  { %682 = vmatprep.subr.bf16.mxu0 %v846_v0 }
 0x113   :  { %683 = vmatpush3.bf16.msra.mxu0 %v726_v38 }
 0x114   :  { %684 = vmatprep.subr.bf16.mxu0 %v846_v0 }
 0x117   :  { %685 = vmatpush3.bf16.msra.mxu0 %v727_v39 }
 0x118   :  { %686 = vmatprep.subr.bf16.mxu0 %v846_v0 }
 0x11b   :  { %687 = vmatpush3.bf16.msra.mxu0 %v728_v40 }
 0x11c   :  { %688 = vmatprep.subr.bf16.mxu0 %v846_v0 }
 0x11f   :  { %689 = vmatpush3.bf16.msra.mxu0 %v729_v41 }
 0x120   :  { %690 = vmatprep.subr.bf16.mxu0 %v846_v0 }
 0x123   :  { %691 = vmatpush3.bf16.msra.mxu0 %v730_v50 }
 0x124   :  { %692 = vmatprep.subr.bf16.mxu0 %v846_v0 }
 0x127   :  { %693 = vmatpush3.bf16.msra.mxu0 %v731_v51 }
 0x1ca   :  { %v314_v43 = vpop.f32.mrf.mxu0 }
 0x1cb   :  { %v315_v44 = vadd.f32 %v568_v42, %v314_v43 }
 0x1cc   :  { %v656_v45 = vpop.f32.mrf.mxu0 }
 0x1cd   :  { %v320_v46 = vmax.f32 %v315_v44, 0.0 }
 0x1ce   :  { %v317_v47 = vpop.f32.mrf.mxu0 }
 0x1cf   :  { %v321_v48 = vpack.c.bf16 %v320_v46, %v320_v46 }
 0x1d0   :  { %v657_v49 = vpop.f32.mrf.mxu0 }
 0x1d1   :  { %675 = vmatmul.mubr.bf16.vlgmr.msra.gmra.mxu1 %v321_v48 }
 0x291   :  { %v427_v53 = vpop.f32.mrf.mxu1 }
 0x292   :  { %v428_v54 = vadd.f32 %v577_v52, %v427_v53 }
 0x293   :  { %v676_v55 = vpop.f32.mrf.mxu1 }
 0x294   :  { %v433_v56 = vmax.f32 %v428_v54, 0.0 }
 0x295   :  { %v430_v57 = vpop.f32.mrf.mxu1 }
 0x296   :  { %v434_v58 = vpack.c.bf16 %v433_v56, %v433_v56 }
 0x297   :  { %v677_v59 = vpop.f32.mrf.mxu1 }
 0x298   :  { %695 = vmatmul.mubr.bf16.vlgmr.msra.gmra.mxu0 %v434_v58 }
 0x358   :  { %v540_v61 = vpop.f32.mrf.mxu0 }
 0x359   :  { %v541_v62 = vadd.f32 %v586_v60, %v540_v61 }
 0x35a   :  { %v696_v63 = vpop.f32.mrf.mxu0 }
 0x35b   :  { %546 = vst [vmem:[#allocation10] sm:$0xff] %v541_v62 }
 0x35c   :  { %v543_v0 = vpop.f32.mrf.mxu0 }
 0x35d   :  { %823 = shalt.err (!%p820_p10)
}
 0x35e   :  { %556 = dma.vmem_to_hbm [thread:$0]  %s554_s26, 128, %s1001_s11, [#allocation4]   ;;  %v697_v1 = vpop.f32.mrf.mxu0 }
 0x35f   :  { %838 = dma.done.wait [#allocation4], 128  }
 0x360   :  { %839 = vsyncadd [#allocation4], 4294967168 }
 0x361   :  { %560 = vsyncpa [#allocation3], 1 }
 0x362   :  { %561 = vsyncpa [#allocation6], 1 }
 0x363   :  { %562 = vsyncpa [#allocation9], 1 }
 0x364   :  { %563 = vsyncpa [#allocation4], 1 }

</bundles_post_ra>
